<compile_context>
chip_gen: v5e
topology: v5e:2x2
jax: 0.10.0
libtpu: 0.0.40
codegen_flags: <defaults>
</compile_context>

<pallas_src>
import functools

import jax
import jax.numpy as jnp
from jax.experimental import pallas as pl
from jax.experimental.pallas import tpu as pltpu

_LANE = 128
_MIB = 1024 * 1024


def _sublane_for(dtype) -> int:
    itemsize = jnp.dtype(dtype).itemsize
    if itemsize >= 4:
        return 8
    if itemsize == 2:
        return 16
    return 32


def _round_up(x: int, m: int) -> int:
    return ((x + m - 1) // m) * m


def _linear_log_softmax_kernel(x_ref, w_ref, b_ref, o_ref):
    # x_ref: (TR, H)  w_ref: (H, Vp)  b_ref: (1, Vp)  o_ref: (TR, Vp)
    x = x_ref[...].astype(jnp.float32)
    w = w_ref[...].astype(jnp.float32)
    logits = jnp.dot(x, w, preferred_element_type=jnp.float32) + b_ref[...].astype(jnp.float32)
    m = jnp.max(logits, axis=-1, keepdims=True)
    # exp(logits - m) is consumed immediately by the sum; the final store re-derives
    # the shifted value from `logits`, so no extra tile-sized temporary stays live.
    lse = jnp.log(jnp.sum(jnp.exp(logits - m), axis=-1, keepdims=True))
    o_ref[...] = (logits - (m + lse)).astype(o_ref.dtype)


def _choose_row_tile(rows, hidden, v_pad, x_bytes, out_bytes, sublane,
                     target_rows, vmem_budget_bytes):
    # Per-row VMEM footprint: double-buffered input + output tiles plus the f32
    # temporaries the kernel keeps live (x upcast, logits, exp scratch).
    per_row = (2 * hidden * x_bytes + 2 * v_pad * out_bytes
               + hidden * 4 + 2 * v_pad * 4)
    # Resident weight/bias (input-dtype copy + f32 upcast inside the kernel).
    fixed = hidden * v_pad * (x_bytes + 4) + v_pad * (x_bytes + 4)
    avail = vmem_budget_bytes - fixed
    if avail < sublane * per_row:
        # Weight alone (nearly) fills the budget.
        # TODO(synk): stream the vocab axis (online log-softmax over a V grid axis)
        # for hidden*vocab weights that do not fit in VMEM.
        avail = sublane * per_row
    tr = min(target_rows, avail // per_row)
    tr = max(sublane, (tr // sublane) * sublane)
    tr = min(tr, _round_up(rows, sublane))
    est = fixed + tr * per_row
    return int(tr), int(est)


@functools.partial(jax.jit, static_argnames=("target_rows", "vmem_budget_bytes"))
def masked_log_model(x, weight, bias, *, target_rows=512,
                     vmem_budget_bytes=40 * _MIB):
    """JAX/Pallas equivalent of MaskedLogModel.forward.

    x:      (..., hidden)
    weight: (hidden, vocab)   (== torch Linear.weight.T)
    bias:   (vocab,)
    """
    orig_shape = x.shape
    hidden = int(orig_shape[-1])
    vocab = int(weight.shape[-1])
    assert weight.shape == (hidden, vocab)
    assert bias.shape == (vocab,)

    rows = 1
    for d in orig_shape[:-1]:
        rows *= int(d)
    x2d = x.reshape(rows, hidden)

    out_dtype = x.dtype
    sublane = _sublane_for(x.dtype)
    x_bytes = jnp.dtype(x.dtype).itemsize
    out_bytes = jnp.dtype(out_dtype).itemsize

    # Lane-dense (unmasked) stores: pad vocab up to a multiple of 128. Padded
    # columns get a hugely negative bias so exp() underflows to 0 and they never
    # affect max / sum; they are sliced off after the kernel.
    v_pad = _round_up(vocab, _LANE)
    if v_pad != vocab:
        weight = jnp.pad(weight, ((0, 0), (0, v_pad - vocab)))
        bias = jnp.pad(bias, (0, v_pad - vocab), constant_values=-1e30)
    bias2d = bias.reshape(1, v_pad)

    tr, est = _choose_row_tile(rows, hidden, v_pad, x_bytes, out_bytes,
                               sublane, target_rows, vmem_budget_bytes)

    # Pad ragged rows up to a multiple of the tile (never fall back to one
    # giant all-rows block); padded rows are computed and discarded.
    rows_pad = _round_up(rows, tr)
    if rows_pad != rows:
        x2d = jnp.pad(x2d, ((0, rows_pad - rows), (0, 0)))

    grid = (rows_pad // tr,)
    vmem_limit = int(min(56 * _MIB, max(2 * est, 16 * _MIB)))

    out2d = pl.pallas_call(
        _linear_log_softmax_kernel,
        out_shape=jax.ShapeDtypeStruct((rows_pad, v_pad), out_dtype),
        grid_spec=pltpu.PrefetchScalarGridSpec(
            num_scalar_prefetch=0,
            grid=grid,
            in_specs=[
                pl.BlockSpec((tr, hidden), lambda i: (i, 0)),      # x row tile
                pl.BlockSpec((hidden, v_pad), lambda i: (0, 0)),   # weight, resident
                pl.BlockSpec((1, v_pad), lambda i: (0, 0)),        # bias, resident
            ],
            out_specs=pl.BlockSpec((tr, v_pad), lambda i: (i, 0)),
        ),
        compiler_params=pltpu.CompilerParams(
            dimension_semantics=("parallel",),
            vmem_limit_bytes=vmem_limit,
        ),
    )(x2d, weight, bias2d)

    out2d = out2d[:rows, :vocab]
    return out2d.reshape(orig_shape[:-1] + (vocab,))


if __name__ == "__main__":
    key = jax.random.PRNGKey(0)
    kx, kw, kb = jax.random.split(key, 3)

    B, S, H, V = 2, 8, 32, 32  # batch, seq, hidden, vocab
    x = jax.random.normal(kx, (B, S, H), dtype=jnp.float32)
    weight = jax.random.normal(kw, (H, V), dtype=jnp.float32) * 0.1
    bias = jax.random.normal(kb, (V,), dtype=jnp.float32) * 0.1

    out = masked_log_model(x, weight, bias)
    out = jax.block_until_ready(out)

    # Reference: torch's linear + LogSoftmax(dim=-1) semantics.
    ref = jax.nn.log_softmax(jnp.dot(x, weight) + bias, axis=-1)
    assert out.shape == (B, S, V) and out.dtype == x.dtype
    assert jnp.max(jnp.abs(out - ref)) < 1e-4

    print("KERNEL_OK")
</pallas_src>

<mosaic_0001>
module attributes {stable_mosaic.version = 11 : i64} {
  func.func @_linear_log_softmax_kernel(%arg0: i32, %arg1: memref<16x32xf32, #tpu.memory_space<vmem>>, %arg2: memref<32x128xf32, #tpu.memory_space<vmem>>, %arg3: memref<1x128xf32, #tpu.memory_space<vmem>>, %arg4: memref<16x128xf32, #tpu.memory_space<vmem>>) attributes {dimension_semantics = [#tpu.dimension_semantics<parallel>], iteration_bounds = array<i64: 1>, scalar_prefetch = 0 : i64, scratch_operands = 0 : i64, tpu.core_type = #tpu.core_type<tc>, window_params = [{transform_indices = @transform_0, window_bounds = array<i64: 16, 32>}, {pipeline_mode = #tpu.pipeline_mode<synchronous>, transform_indices = @transform_1, window_bounds = array<i64: 32, 128>}, {pipeline_mode = #tpu.pipeline_mode<synchronous>, transform_indices = @transform_2, window_bounds = array<i64: 1, 128>}, {transform_indices = @transform_3, window_bounds = array<i64: 16, 128>}]} {
    %c0 = arith.constant 0 : index
    %c0_0 = arith.constant 0 : index
    %0 = vector.load %arg1[%c0, %c0_0] : memref<16x32xf32, #tpu.memory_space<vmem>>, vector<16x32xf32>
    %c0_1 = arith.constant 0 : index
    %c0_2 = arith.constant 0 : index
    %1 = vector.load %arg2[%c0_1, %c0_2] : memref<32x128xf32, #tpu.memory_space<vmem>>, vector<32x128xf32>
    %cst = arith.constant dense<0.000000e+00> : vector<16x128xf32>
    %2 = tpu.matmul %0, %1, %cst {dimension_numbers = #tpu.dot_dimension_numbers<[1], [0], [0], [1], [0, 0, 1, 1], [], []>} : vector<16x32xf32>, vector<32x128xf32>, vector<16x128xf32> -> vector<16x128xf32>
    %c0_3 = arith.constant 0 : index
    %c0_4 = arith.constant 0 : index
    %3 = vector.load %arg3[%c0_3, %c0_4] : memref<1x128xf32, #tpu.memory_space<vmem>>, vector<1x128xf32>
    %4 = vector.broadcast %3 : vector<1x128xf32> to vector<16x128xf32>
    %5 = arith.addf %2, %4 : vector<16x128xf32>
    %cst_5 = arith.constant dense<0xFF800000> : vector<16xf32>
    %6 = vector.multi_reduction <maximumf>, %5, %cst_5 [1] : vector<16x128xf32> to vector<16xf32>
    %7 = vector.shape_cast %6 : vector<16xf32> to vector<16x1xf32>
    %8 = vector.broadcast %7 : vector<16x1xf32> to vector<16x128xf32>
    %9 = arith.subf %5, %8 : vector<16x128xf32>
    %10 = math.exp %9 : vector<16x128xf32>
    %cst_6 = arith.constant dense<0.000000e+00> : vector<16xf32>
    %11 = vector.multi_reduction <add>, %10, %cst_6 [1] : vector<16x128xf32> to vector<16xf32>
    %12 = vector.shape_cast %11 : vector<16xf32> to vector<16x1xf32>
    %13 = math.log %12 : vector<16x1xf32>
    %14 = arith.addf %7, %13 : vector<16x1xf32>
    %15 = vector.broadcast %14 : vector<16x1xf32> to vector<16x128xf32>
    %16 = arith.subf %5, %15 : vector<16x128xf32>
    %c0_7 = arith.constant 0 : index
    %c0_8 = arith.constant 0 : index
    %17 = vector.load %arg4[%c0_7, %c0_8] : memref<16x128xf32, #tpu.memory_space<vmem>>, vector<16x128xf32>
    tpu.vector_store %arg4[%c0_7, %c0_8], %16 {strides = array<i32>} : memref<16x128xf32, #tpu.memory_space<vmem>>, vector<16x128xf32>,
    return
  }
  func.func @transform_0(%arg0: i32) -> (i32, i32) {
    %c0_i32 = arith.constant 0 : i32
    %c0_i32_0 = arith.constant 0 : i32
    return %arg0, %c0_i32 : i32, i32
  }
  func.func @transform_1(%arg0: i32) -> (i32, i32) {
    %c0_i32 = arith.constant 0 : i32
    %c0_i32_0 = arith.constant 0 : i32
    %c0_i32_1 = arith.constant 0 : i32
    return %c0_i32, %c0_i32_0 : i32, i32
  }
  func.func @transform_2(%arg0: i32) -> (i32, i32) {
    %c0_i32 = arith.constant 0 : i32
    %c0_i32_0 = arith.constant 0 : i32
    %c0_i32_1 = arith.constant 0 : i32
    return %c0_i32, %c0_i32_0 : i32, i32
  }
  func.func @transform_3(%arg0: i32) -> (i32, i32) {
    %c0_i32 = arith.constant 0 : i32
    %c0_i32_0 = arith.constant 0 : i32
    return %arg0, %c0_i32 : i32, i32
  }
}

</mosaic_0001>

<bundles_post_ra>
// kernel: masked_log_model.1
= control target key start
LH: loop header
LB: loop body
LE: loop exit
PB: predicated region body
PF: predicated region fallthrough
CT: control target
= control target key end

     0   :  { %vm24_vm0 = vcmask 261120   ;;  %s144_s1 = inlined_call_operand.vmem [shape: f32[32,128], index: 1, kind: input, shape index: {}]   ;;  %s145_s2 = inlined_call_operand.vmem [shape: f32[1,128], index: 2, kind: input, shape index: {}]   ;;  %s146_s0 = inlined_call_operand.vmem [shape: f32[16,32], index: 0, kind: input, shape index: {}]   ;;  %s147_s3 = inlined_call_operand.vmem [shape: f32[16,128], index: 3, kind: output, shape index: {}]  }
   0x1   :  { %v19_v0 = vld [vmem:[%s144_s1 + $0x18] sm:$0xff]  ;;  %v18_v1 = vld [vmem:[%s144_s1 + $0x10] sm:$0xff]  ;;  %v17_v2 = vld [vmem:[%s144_s1 + $0x8] sm:$0xff] }
   0x2   :  { %43 = vmatpush.msra.mxu0 %v19_v0  ;;  %84 = vmatpush.msra.mxu1 %v19_v0  ;;  %v16_v3 = vld [vmem:[%s144_s1] sm:$0xff]  ;;  %v15_v5 = vld [vmem:[%s146_s0 + $0x8] sm:$0xff] }
   0x3   :  { %v14_v4 = vld [vmem:[%s146_s0] sm:$0xff] }
   0x4   :  { %44 = vmatpush.msra.mxu0 %v18_v1  ;;  %85 = vmatpush.msra.mxu1 %v18_v1  ;;  %v88_v6 = vld [vmem:[%s145_s2] ss:$0 sm:$0xff] }
   0x6   :  { %45 = vmatpush.msra.mxu0 %v17_v2  ;;  %86 = vmatpush.msra.mxu1 %v17_v2 }
   0x8   :  { %46 = vmatpush.msra.mxu0 %v16_v3  ;;  %87 = vmatpush.msra.mxu1 %v16_v3 }
   0x9   :  { %82 = vmatmul.msk.f32.vlgmr.msra.gmra.mxu0 %vm24_vm0, %v14_v4  ;;  %83 = vmatmul.msk.f32.vlgmr.msra.gmra.mxu1 %vm24_vm0, %v15_v5 }
  0x86   :  { %v48_v7 = vpop.f32.mrf.mxu0  ;;  %v51_v9 = vpop.f32.mrf.mxu1 }
  0x87   :  { %v49_v8 = vadd.f32 %v88_v6, %v48_v7  ;;  %v52_v10 = vadd.f32 %v88_v6, %v51_v9 }
  0x89   :  { %54 = vmax.xlane.f32.xlu0 %v49_v8 }
  0x91   :  { %56 = vmax.xlane.f32.xlu0 %v52_v10 }
  0xfc   :  { %v55_v11 = vpop.xlane.xlu0 %54 }
  0xfd   :  { %v58_v12 = vsub.f32 %v49_v8, %v55_v11 }
  0xff   :  { %v60_v13 = vmul.f32 1.442695, %v58_v12 }
 0x101   :  { %89 = vpow2.f32 %v60_v13 }
 0x104   :  { %v57_v14 = vpop.xlane.xlu0 %56 }
 0x105   :  { %v59_v15 = vsub.f32 %v52_v10, %v57_v14 }
 0x107   :  { %v90_v16 = vpop.eup %89  ;;  %v62_v17 = vmul.f32 1.442695, %v59_v15 }
 0x108   :  { %64 = vadd.xlane.f32.xlu1 %v90_v16 }
 0x109   :  { %91 = vpow2.f32 %v62_v17 }
 0x10f   :  { %v92_v18 = vpop.eup %91 }
 0x110   :  { %66 = vadd.xlane.f32.xlu1 %v92_v18 }
 0x17b   :  { %v65_v19 = vpop.xlane.xlu1 %64 }
 0x17c   :  { %93 = vlog2.f32 %v65_v19 }
 0x182   :  { %v94_v20 = vpop.eup %93 }
 0x183   :  { %v69_v21 = vmul.f32 0.6931472, %v94_v20  ;;  %v67_v22 = vpop.xlane.xlu1 %66 }
 0x184   :  { %95 = vlog2.f32 %v67_v22 }
 0x185   :  { %v72_v23 = vadd.f32 %v69_v21, %v55_v11 }
 0x187   :  { %v74_v24 = vsub.f32 %v49_v8, %v72_v23 }
 0x189   :  { %76 = vst [vmem:[%s147_s3] sm:$0xff] %v74_v24 }
 0x18a   :  { %v96_v25 = vpop.eup %95 }
 0x18b   :  { %v71_v26 = vmul.f32 0.6931472, %v96_v25 }
 0x18d   :  { %v73_v27 = vadd.f32 %v71_v26, %v57_v14 }
 0x18f   :  { %v75_v28 = vsub.f32 %v52_v10, %v73_v27 }
 0x191   :  { %77 = vst [vmem:[%s147_s3 + $0x8] sm:$0xff] %v75_v28 }

</bundles_post_ra>
